<compile_context>
chip_gen: v7x
topology: tpu7x:2x2x1
jax: 0.10.0
libtpu: 0.0.40
codegen_flags: <defaults>
</compile_context>

<pallas_src>
import numpy as np
import jax
import jax.numpy as jnp
from jax.experimental import pallas as pl
from jax.experimental.pallas import tpu as pltpu

# db2 decomposition low-pass filter (pywt ordering: Wavelet('db2').dec_lo)
_DB2_DEC_LO = np.array(
    [-0.12940952255092145, 0.22414386804185735,
     0.8365163037378079, 0.48296291314469025], dtype=np.float64)
_FLEN = 4  # filter length


def _dwt_lowpass_matrix(L: int) -> np.ndarray:
    """(L, L_out) float64 matrix reproducing one pywt db2 low-pass dwt,
    'symmetric' extension mode, along a length-L axis."""
    F = _FLEN
    rev = _DB2_DEC_LO[::-1]
    L_out = (L + F - 1) // 2
    W = np.zeros((L, L_out), dtype=np.float64)
    for o in range(L_out):
        for k in range(F):
            m = 2 * o + 1 + k  # index into extended signal (length L + 2*(F-1))
            if m < F - 1:                 # left symmetric extension
                i = (F - 2) - m
            elif m < L + F - 1:           # body
                i = m - (F - 1)
            else:                         # right symmetric extension
                i = 2 * L + (F - 2) - m
            W[i, o] += rev[k]
    return W


def _multilevel_lowpass_matrix(L: int, level: int) -> np.ndarray:
    """Compose `level` single-level low-pass matrices: (L, L_level)."""
    W = np.eye(L, dtype=np.float64)
    cur = L
    for _ in range(level):
        W1 = _dwt_lowpass_matrix(cur)
        W = W @ W1
        cur = W1.shape[1]
    return W


# ----------------------------- Pallas kernel ------------------------------

def _fused_dwt_kernel(x_ref, wdt_ref, khw_ref, o_ref):
    # x_ref  : (Bt, D, H*W)     input volumes (original dtype; bf16 stays bf16)
    # wdt_ref: (D2, D)          WD^T, in the input dtype
    # khw_ref: (H*W, H2*W2)     kron(WH, WW), f32
    # o_ref  : (Bt, D2, H2*W2)
    bt = x_ref.shape[0]
    d2 = wdt_ref.shape[0]

    x = x_ref[...]  # no f32 upcast: MXU consumes the input dtype directly

    # Stage 1: contract the D axis first (batched over the Bt volumes in the
    # tile; WD^T broadcast across the batch dim, so FLOPs / weight VMEM are
    # linear in Bt).  f32 accumulation on the MXU; intermediate is lane-dense
    # (last dim = H*W).
    wdt_b = jnp.broadcast_to(wdt_ref[...], (bt,) + wdt_ref.shape)
    a = jax.lax.dot_general(
        wdt_b, x,
        dimension_numbers=(((2,), (1,)), ((0,), (0,))),
        preferred_element_type=jnp.float32)          # (Bt, D2, H*W), f32

    # Stage 2: contract H*W against the fused kron(WH, WW) operator, kept in
    # f32 so there is a single rounding at the final store.  A small static
    # unroll over the D2 output planes avoids any sublane-unaligned reshape.
    khw = khw_ref[...]
    for e in range(d2):
        plane = jnp.dot(a[:, e, :], khw, preferred_element_type=jnp.float32)
        o_ref[:, e, :] = plane.astype(o_ref.dtype)   # (Bt, H2*W2)


def _pick_batch_tile(B: int, vol_bytes: int,
                     target_bytes: int = 4 << 20,
                     min_bytes: int = 256 << 10,
                     cap: int = 256) -> int:
    """Largest batch tile that divides B, gives ~target-sized (multi-MiB)
    input blocks, and leaves >= 4 grid steps (v7x megacore / pipelining) when
    blocks can stay reasonably large."""
    vol_bytes = max(1, vol_bytes)
    want = int(max(1, min(cap, B, target_bytes // vol_bytes)))
    if B // want < 4:
        alt = -(-B // 4)  # ceil(B / 4) -> ~4 grid steps
        if alt >= 1 and alt * vol_bytes >= min_bytes:
            want = min(want, alt)
    for bt in range(want, 0, -1):
        if B % bt == 0:
            # Don't settle for a pathologically small divisor if the whole
            # batch still fits comfortably in VMEM as a single block.
            if bt < max(1, want // 8) and B * vol_bytes <= (8 << 20):
                return B
            return bt
    return B


def filter_trans_forward(x: jax.Array, level: int = 2, axes=(2, 3, 4)) -> jax.Array:
    """Equivalent of pywt.wavedecn(x, 'db2', level=level, axes=(2,3,4))[0]."""
    assert x.ndim == 5 and tuple(axes) == (2, 3, 4), "expects NCDHW, axes (2,3,4)"
    N, C, D, H, W = x.shape

    # Per-axis composed (2-level) low-pass matrices (host-side, compile-time).
    WD = _multilevel_lowpass_matrix(D, level)   # (D, D2)
    WH = _multilevel_lowpass_matrix(H, level)   # (H, H2)
    WW = _multilevel_lowpass_matrix(W, level)   # (W, W2)
    D2, H2, W2 = WD.shape[1], WH.shape[1], WW.shape[1]
    HW, HW2 = H * W, H2 * W2

    B = N * C
    itemsize = jnp.dtype(x.dtype).itemsize
    Bt = _pick_batch_tile(B, D * HW * itemsize)

    # Operators: WD^T in the input dtype (goes through the MXU with x), fused
    # kron(WH, WW) kept in f32 (it multiplies the f32 accumulator).
    wdt = jnp.asarray(WD.T, dtype=x.dtype)                     # (D2, D)
    khw = jnp.asarray(np.kron(WH, WW), dtype=jnp.float32)      # (H*W, H2*W2)

    # Pure-metadata reshape: (N,C,D,H,W) -> (B, D, H*W); no HBM copy.
    x3 = x.reshape(B, D, HW)

    # Explicit VMEM budget (v5e default scoped limit is only 16 MiB; v7x has
    # 64 MiB physical) -- computed from the actual block sizes, with headroom.
    in_blk = Bt * D * HW * itemsize
    out_blk = Bt * D2 * HW2 * itemsize
    w_bytes = D2 * D * itemsize + HW * HW2 * 4
    a_bytes = Bt * max(8, D2) * HW * 4
    need = 2 * (in_blk + out_blk + w_bytes) + 3 * a_bytes + (2 << 20)
    vmem_limit = int(min(max(need, 16 << 20), 48 << 20))

    out3 = pl.pallas_call(
        _fused_dwt_kernel,
        out_shape=jax.ShapeDtypeStruct((B, D2, HW2), x.dtype),
        grid_spec=pltpu.PrefetchScalarGridSpec(
            num_scalar_prefetch=0,
            grid=(B // Bt,),
            in_specs=[
                pl.BlockSpec((Bt, D, HW), lambda i: (i, 0, 0)),
                # Constant index maps: weights stay VMEM-resident, no re-DMA.
                pl.BlockSpec((D2, D), lambda i: (0, 0)),
                pl.BlockSpec((HW, HW2), lambda i: (0, 0)),
            ],
            out_specs=pl.BlockSpec((Bt, D2, HW2), lambda i: (i, 0, 0)),
        ),
        compiler_params=pltpu.CompilerParams(
            dimension_semantics=("parallel",),
            vmem_limit_bytes=vmem_limit),
    )(x3, wdt, khw)

    # Pure-metadata reshape back to the 5-D coefficient layout.
    return out3.reshape(N, C, D2, H2, W2)


if __name__ == "__main__":
    key = jax.random.PRNGKey(0)
    # Small 5-D input (N, C, D, H, W); D,H,W=16 supports a clean level-2 db2 DWT.
    x = jax.random.normal(key, (2, 3, 16, 16, 16), dtype=jnp.float32)

    out = jax.block_until_ready(filter_trans_forward(x, level=2, axes=(2, 3, 4)))

    # level 1: 16 -> (16+3)//2 = 9 ; level 2: 9 -> (9+3)//2 = 6
    assert out.shape == (2, 3, 6, 6, 6), out.shape
    assert out.dtype == x.dtype

    # Pure-numpy reference: 2-level db2 'symmetric' low-pass along axes (2,3,4).
    def ref_dwt1d(v):
        e = np.concatenate([v[2::-1], v, v[:-4:-1]])      # symmetric extension
        full = np.convolve(e, _DB2_DEC_LO, mode='valid')  # correlate w/ dec_lo
        return full[1::2]                                  # downsample by 2

    ref = np.asarray(x, dtype=np.float64)
    for _ in range(2):
        for ax in (2, 3, 4):
            ref = np.apply_along_axis(ref_dwt1d, ax, ref)

    np.testing.assert_allclose(np.asarray(out, dtype=np.float64), ref,
                               rtol=2e-3, atol=2e-3)

    # bf16 passthrough smoke test (halves HBM traffic; f32 accumulation keeps
    # accuracy within bf16 expectations).
    xb = x.astype(jnp.bfloat16)
    outb = jax.block_until_ready(filter_trans_forward(xb, level=2, axes=(2, 3, 4)))
    assert outb.shape == (2, 3, 6, 6, 6) and outb.dtype == jnp.bfloat16
    outb_f = np.asarray(outb.astype(jnp.float32), dtype=np.float64)
    assert np.isfinite(outb_f).all()
    np.testing.assert_allclose(outb_f, ref, rtol=1e-1, atol=1e-1)

    print("KERNEL_OK")
</pallas_src>

<mosaic_0001>
module attributes {stable_mosaic.version = 11 : i64} {
  func.func @_fused_dwt_kernel(%arg0: i32, %arg1: memref<6x16x256xf32, #tpu.memory_space<vmem>>, %arg2: memref<6x16xf32, #tpu.memory_space<vmem>>, %arg3: memref<256x36xf32, #tpu.memory_space<vmem>>, %arg4: memref<6x6x36xf32, #tpu.memory_space<vmem>>) attributes {dimension_semantics = [#tpu.dimension_semantics<parallel>], iteration_bounds = array<i64: 1>, scalar_prefetch = 0 : i64, scratch_operands = 0 : i64, tpu.core_type = #tpu.core_type<tc>, window_params = [{transform_indices = @transform_0, window_bounds = array<i64: 6, 16, 256>}, {pipeline_mode = #tpu.pipeline_mode<synchronous>, transform_indices = @transform_1, window_bounds = array<i64: 6, 16>}, {pipeline_mode = #tpu.pipeline_mode<synchronous>, transform_indices = @transform_2, window_bounds = array<i64: 256, 36>}, {transform_indices = @transform_3, window_bounds = array<i64: 6, 6, 36>}]} {
    %c0 = arith.constant 0 : index
    %c0_0 = arith.constant 0 : index
    %c0_1 = arith.constant 0 : index
    %0 = vector.load %arg1[%c0, %c0_0, %c0_1] : memref<6x16x256xf32, #tpu.memory_space<vmem>>, vector<6x16x256xf32>
    %c0_2 = arith.constant 0 : index
    %c0_3 = arith.constant 0 : index
    %1 = vector.load %arg2[%c0_2, %c0_3] : memref<6x16xf32, #tpu.memory_space<vmem>>, vector<6x16xf32>
    %2 = vector.shape_cast %1 : vector<6x16xf32> to vector<1x6x16xf32>
    %3 = vector.broadcast %2 : vector<1x6x16xf32> to vector<6x6x16xf32>
    %cst = arith.constant dense<0.000000e+00> : vector<6x6x256xf32>
    %4 = tpu.matmul %3, %0, %cst {dimension_numbers = #tpu.dot_dimension_numbers<[2], [1], [1], [2], [0, 0, 0, 1, 1, 2], [0], [0]>} : vector<6x6x16xf32>, vector<6x16x256xf32>, vector<6x6x256xf32> -> vector<6x6x256xf32>
    %c0_4 = arith.constant 0 : index
    %c0_5 = arith.constant 0 : index
    %5 = vector.load %arg3[%c0_4, %c0_5] : memref<256x36xf32, #tpu.memory_space<vmem>>, vector<256x36xf32>
    %6 = vector.extract_strided_slice %4 {offsets = [0, 0, 0], sizes = [6, 1, 256], strides = [1, 1, 1]} : vector<6x6x256xf32> to vector<6x1x256xf32>
    %7 = vector.shape_cast %6 : vector<6x1x256xf32> to vector<6x256xf32>
    %cst_6 = arith.constant dense<0.000000e+00> : vector<6x36xf32>
    %8 = tpu.matmul %7, %5, %cst_6 {dimension_numbers = #tpu.dot_dimension_numbers<[1], [0], [0], [1], [0, 0, 1, 1], [], []>} : vector<6x256xf32>, vector<256x36xf32>, vector<6x36xf32> -> vector<6x36xf32>
    %c0_7 = arith.constant 0 : index
    %c0_8 = arith.constant 0 : index
    %c0_9 = arith.constant 0 : index
    %9 = vector.load %arg4[%c0_7, %c0_8, %c0_9] : memref<6x6x36xf32, #tpu.memory_space<vmem>>, vector<6x1x36xf32>
    %10 = vector.shape_cast %9 : vector<6x1x36xf32> to vector<6x36xf32>
    %11 = vector.shape_cast %8 : vector<6x36xf32> to vector<6x1x36xf32>
    tpu.vector_store %arg4[%c0_7, %c0_8, %c0_9], %11 {strides = array<i32>} : memref<6x6x36xf32, #tpu.memory_space<vmem>>, vector<6x1x36xf32>,
    %12 = vector.extract_strided_slice %4 {offsets = [0, 1, 0], sizes = [6, 1, 256], strides = [1, 1, 1]} : vector<6x6x256xf32> to vector<6x1x256xf32>
    %13 = vector.shape_cast %12 : vector<6x1x256xf32> to vector<6x256xf32>
    %cst_10 = arith.constant dense<0.000000e+00> : vector<6x36xf32>
    %14 = tpu.matmul %13, %5, %cst_10 {dimension_numbers = #tpu.dot_dimension_numbers<[1], [0], [0], [1], [0, 0, 1, 1], [], []>} : vector<6x256xf32>, vector<256x36xf32>, vector<6x36xf32> -> vector<6x36xf32>
    %c0_11 = arith.constant 0 : index
    %c1 = arith.constant 1 : index
    %c0_12 = arith.constant 0 : index
    %15 = vector.load %arg4[%c0_11, %c1, %c0_12] : memref<6x6x36xf32, #tpu.memory_space<vmem>>, vector<6x1x36xf32>
    %16 = vector.shape_cast %15 : vector<6x1x36xf32> to vector<6x36xf32>
    %17 = vector.shape_cast %14 : vector<6x36xf32> to vector<6x1x36xf32>
    tpu.vector_store %arg4[%c0_11, %c1, %c0_12], %17 {strides = array<i32>} : memref<6x6x36xf32, #tpu.memory_space<vmem>>, vector<6x1x36xf32>,
    %18 = vector.extract_strided_slice %4 {offsets = [0, 2, 0], sizes = [6, 1, 256], strides = [1, 1, 1]} : vector<6x6x256xf32> to vector<6x1x256xf32>
    %19 = vector.shape_cast %18 : vector<6x1x256xf32> to vector<6x256xf32>
    %cst_13 = arith.constant dense<0.000000e+00> : vector<6x36xf32>
    %20 = tpu.matmul %19, %5, %cst_13 {dimension_numbers = #tpu.dot_dimension_numbers<[1], [0], [0], [1], [0, 0, 1, 1], [], []>} : vector<6x256xf32>, vector<256x36xf32>, vector<6x36xf32> -> vector<6x36xf32>
    %c0_14 = arith.constant 0 : index
    %c2 = arith.constant 2 : index
    %c0_15 = arith.constant 0 : index
    %21 = vector.load %arg4[%c0_14, %c2, %c0_15] : memref<6x6x36xf32, #tpu.memory_space<vmem>>, vector<6x1x36xf32>
    %22 = vector.shape_cast %21 : vector<6x1x36xf32> to vector<6x36xf32>
    %23 = vector.shape_cast %20 : vector<6x36xf32> to vector<6x1x36xf32>
    tpu.vector_store %arg4[%c0_14, %c2, %c0_15], %23 {strides = array<i32>} : memref<6x6x36xf32, #tpu.memory_space<vmem>>, vector<6x1x36xf32>,
    %24 = vector.extract_strided_slice %4 {offsets = [0, 3, 0], sizes = [6, 1, 256], strides = [1, 1, 1]} : vector<6x6x256xf32> to vector<6x1x256xf32>
    %25 = vector.shape_cast %24 : vector<6x1x256xf32> to vector<6x256xf32>
    %cst_16 = arith.constant dense<0.000000e+00> : vector<6x36xf32>
    %26 = tpu.matmul %25, %5, %cst_16 {dimension_numbers = #tpu.dot_dimension_numbers<[1], [0], [0], [1], [0, 0, 1, 1], [], []>} : vector<6x256xf32>, vector<256x36xf32>, vector<6x36xf32> -> vector<6x36xf32>
    %c0_17 = arith.constant 0 : index
    %c3 = arith.constant 3 : index
    %c0_18 = arith.constant 0 : index
    %27 = vector.load %arg4[%c0_17, %c3, %c0_18] : memref<6x6x36xf32, #tpu.memory_space<vmem>>, vector<6x1x36xf32>
    %28 = vector.shape_cast %27 : vector<6x1x36xf32> to vector<6x36xf32>
    %29 = vector.shape_cast %26 : vector<6x36xf32> to vector<6x1x36xf32>
    tpu.vector_store %arg4[%c0_17, %c3, %c0_18], %29 {strides = array<i32>} : memref<6x6x36xf32, #tpu.memory_space<vmem>>, vector<6x1x36xf32>,
    %30 = vector.extract_strided_slice %4 {offsets = [0, 4, 0], sizes = [6, 1, 256], strides = [1, 1, 1]} : vector<6x6x256xf32> to vector<6x1x256xf32>
    %31 = vector.shape_cast %30 : vector<6x1x256xf32> to vector<6x256xf32>
    %cst_19 = arith.constant dense<0.000000e+00> : vector<6x36xf32>
    %32 = tpu.matmul %31, %5, %cst_19 {dimension_numbers = #tpu.dot_dimension_numbers<[1], [0], [0], [1], [0, 0, 1, 1], [], []>} : vector<6x256xf32>, vector<256x36xf32>, vector<6x36xf32> -> vector<6x36xf32>
    %c0_20 = arith.constant 0 : index
    %c4 = arith.constant 4 : index
    %c0_21 = arith.constant 0 : index
    %33 = vector.load %arg4[%c0_20, %c4, %c0_21] : memref<6x6x36xf32, #tpu.memory_space<vmem>>, vector<6x1x36xf32>
    %34 = vector.shape_cast %33 : vector<6x1x36xf32> to vector<6x36xf32>
    %35 = vector.shape_cast %32 : vector<6x36xf32> to vector<6x1x36xf32>
    tpu.vector_store %arg4[%c0_20, %c4, %c0_21], %35 {strides = array<i32>} : memref<6x6x36xf32, #tpu.memory_space<vmem>>, vector<6x1x36xf32>,
    %36 = vector.extract_strided_slice %4 {offsets = [0, 5, 0], sizes = [6, 1, 256], strides = [1, 1, 1]} : vector<6x6x256xf32> to vector<6x1x256xf32>
    %37 = vector.shape_cast %36 : vector<6x1x256xf32> to vector<6x256xf32>
    %cst_22 = arith.constant dense<0.000000e+00> : vector<6x36xf32>
    %38 = tpu.matmul %37, %5, %cst_22 {dimension_numbers = #tpu.dot_dimension_numbers<[1], [0], [0], [1], [0, 0, 1, 1], [], []>} : vector<6x256xf32>, vector<256x36xf32>, vector<6x36xf32> -> vector<6x36xf32>
    %c0_23 = arith.constant 0 : index
    %c5 = arith.constant 5 : index
    %c0_24 = arith.constant 0 : index
    %39 = vector.load %arg4[%c0_23, %c5, %c0_24] : memref<6x6x36xf32, #tpu.memory_space<vmem>>, vector<6x1x36xf32>
    %40 = vector.shape_cast %39 : vector<6x1x36xf32> to vector<6x36xf32>
    %41 = vector.shape_cast %38 : vector<6x36xf32> to vector<6x1x36xf32>
    tpu.vector_store %arg4[%c0_23, %c5, %c0_24], %41 {strides = array<i32>} : memref<6x6x36xf32, #tpu.memory_space<vmem>>, vector<6x1x36xf32>,
    return
  }
  func.func @transform_0(%arg0: i32) -> (i32, i32, i32) {
    %c0_i32 = arith.constant 0 : i32
    %c0_i32_0 = arith.constant 0 : i32
    %c0_i32_1 = arith.constant 0 : i32
    return %arg0, %c0_i32, %c0_i32_0 : i32, i32, i32
  }
  func.func @transform_1(%arg0: i32) -> (i32, i32) {
    %c0_i32 = arith.constant 0 : i32
    %c0_i32_0 = arith.constant 0 : i32
    %c0_i32_1 = arith.constant 0 : i32
    return %c0_i32, %c0_i32_0 : i32, i32
  }
  func.func @transform_2(%arg0: i32) -> (i32, i32) {
    %c0_i32 = arith.constant 0 : i32
    %c0_i32_0 = arith.constant 0 : i32
    %c0_i32_1 = arith.constant 0 : i32
    return %c0_i32, %c0_i32_0 : i32, i32
  }
  func.func @transform_3(%arg0: i32) -> (i32, i32, i32) {
    %c0_i32 = arith.constant 0 : i32
    %c0_i32_0 = arith.constant 0 : i32
    %c0_i32_1 = arith.constant 0 : i32
    return %arg0, %c0_i32, %c0_i32_0 : i32, i32, i32
  }
}

</mosaic_0001>

<bundles_post_ra>
// kernel: tpu_custom_call.1
= control target key start
LH: loop header
LB: loop body
LE: loop exit
PB: predicated region body
PF: predicated region fallthrough
CT: control target
= control target key end

     0   :  { %v1909_v7 = vmov 0.0   ;;  %vm40_vm0 = vcmask 130048   ;;  %s2544_s0 = inlined_call_operand.vmem [shape: f32[6,16,256], index: 0, kind: input, shape index: {}]   ;;  %s2545_s1 = inlined_call_operand.vmem [shape: f32[6,16], index: 1, kind: input, shape index: {}]   ;;  %s2546_s2 = inlined_call_operand.vmem [shape: f32[256,36], index: 2, kind: input, shape index: {}]   ;;  %s2547_s3 = inlined_call_operand.hbm [shape: f32[6,6,36], index: 3, kind: output, shape index: {}]  }
   0x1   :  { %v16_v0 = vld [vmem:[%s2544_s0 + $0x8] sm:$0xff]  ;;  %v18_v1 = vld [vmem:[%s2544_s0 + $0x18] sm:$0xff]  ;;  %v15_v5 = vld [vmem:[%s2544_s0] sm:$0xff]  ;;  %108 = vmatprep.mubr.f32.mxu0 %v1909_v7  ;;  %179 = vmatprep.mubr.f32.mxu1 %v1909_v7 }
   0x2   :  { %v20_v2 = vld [vmem:[%s2544_s0 + $0x28] sm:$0xff]  ;;  %v1664_v3 = vpack.c.bf16 %v18_v1, %v16_v0  ;;  %v22_v4 = vld [vmem:[%s2544_s0 + $0x38] sm:$0xff]  ;;  %v17_v6 = vld [vmem:[%s2544_s0 + $0x10] sm:$0xff] }
   0x3   :  { %v1668_v8 = vpack.c.bf16 %v22_v4, %v20_v2  ;;  %v1666_v9 = vpack.c.bf16 %v17_v6, %v15_v5  ;;  %v19_v10 = vld [vmem:[%s2544_s0 + $0x20] sm:$0xff]  ;;  %v21_v11 = vld [vmem:[%s2544_s0 + $0x30] sm:$0xff]  ;;  %v24_v14 = vld [vmem:[%s2544_s0 + $0x48] sm:$0xff] }
   0x4   :  { %v1963_v12 = vld [vmem:[%s2545_s1] sm:$0x3f]  ;;  %1665 = vmatprep.subr.bf16.mxu0 %v1664_v3  ;;  %v1670_v13 = vpack.c.bf16 %v21_v11, %v19_v10  ;;  %v26_v15 = vld [vmem:[%s2544_s0 + $0x58] sm:$0xff]  ;;  %v28_v16 = vld [vmem:[%s2544_s0 + $0x68] sm:$0xff] }
   0x5   :  { %1669 = vmatprep.subr.bf16.mxu1 %v1668_v8  ;;  %1667 = vmatpush1.bf16.msra.mxu0 %v1666_v9  ;;  %v1672_v17 = vpack.c.bf16 %v26_v15, %v24_v14  ;;  %v30_v18 = vld [vmem:[%s2544_s0 + $0x78] sm:$0xff]  ;;  %v23_v19 = vld [vmem:[%s2544_s0 + $0x40] sm:$0xff]  ;;  %v25_v20 = vld [vmem:[%s2544_s0 + $0x50] sm:$0xff] }
   0x6   :  { %1671 = vmatpush1.bf16.msra.mxu1 %v1670_v13  ;;  %v1676_v21 = vpack.c.bf16 %v30_v18, %v28_v16  ;;  %v1674_v22 = vpack.c.bf16 %v25_v20, %v23_v19  ;;  %v27_v23 = vld [vmem:[%s2544_s0 + $0x60] sm:$0xff]  ;;  %v29_v24 = vld [vmem:[%s2544_s0 + $0x70] sm:$0xff]  ;;  %v32_v25 = vld [vmem:[%s2544_s0 + $0x88] sm:$0xff] }
   0x7   :  { %1673 = vmatprep.subr.bf16.mxu0 %v1672_v17  ;;  %v1678_v26 = vpack.c.bf16 %v29_v24, %v27_v23  ;;  %v34_v27 = vld [vmem:[%s2544_s0 + $0x98] sm:$0xff]  ;;  %v36_v28 = vld [vmem:[%s2544_s0 + $0xa8] sm:$0xff]  ;;  %v31_v32 = vld [vmem:[%s2544_s0 + $0x80] sm:$0xff] }
   0x8   :  { %v38_v29 = vld [vmem:[%s2544_s0 + $0xb8] sm:$0xff]  ;;  %1448 = vmatmul.mubr.msk.f32.vlgmr.msra.gmra.mrb[0].mxu0 %vm40_vm0, %v1963_v12  ;;  %1677 = vmatprep.subr.bf16.mxu1 %v1676_v21  ;;  %v1680_v30 = vpack.c.bf16 %v34_v27, %v32_v25  ;;  %v33_v33 = vld [vmem:[%s2544_s0 + $0x90] sm:$0xff]  ;;  %v35_v34 = vld [vmem:[%s2544_s0 + $0xa0] sm:$0xff] }
   0x9   :  { %v1684_v31 = vpack.c.bf16 %v38_v29, %v36_v28  ;;  %1449 = vmatmul.mubr.msk.f32.vlgmr.msra.gmra.mrb[0].mxu1 %vm40_vm0, %v1963_v12  ;;  %1675 = vmatpush1.bf16.msra.mxu0 %v1674_v22  ;;  %v1682_v35 = vpack.c.bf16 %v33_v33, %v31_v32  ;;  %v37_v36 = vld [vmem:[%s2544_s0 + $0xb0] sm:$0xff]  ;;  %v486_v37 = vld [vmem:[%s2546_s2 + $0x80] sm:$0xff]  ;;  %v487_v38 = vld [vmem:[%s2546_s2 + $0x88] sm:$0xff] }
   0xa   :  { %1679 = vmatpush1.bf16.msra.mxu1 %v1678_v26  ;;  %250 = vmatprep.mubr.f32.mxu0 %v1909_v7  ;;  %v1686_v39 = vpack.c.bf16 %v37_v36, %v35_v34  ;;  %v470_v40 = vld [vmem:[%s2546_s2] sm:$0xff]  ;;  %v471_v41 = vld [vmem:[%s2546_s2 + $0x8] sm:$0xff]  ;;  %v2031_v42 = vpack.c.bf16 %v487_v38, %v486_v37  ;;  %v488_v43 = vld [vmem:[%s2546_s2 + $0x90] sm:$0xff] }
   0xb   :  { %321 = vmatprep.mubr.f32.mxu1 %v1909_v7  ;;  %1681 = vmatprep.subr.bf16.mxu0 %v1680_v30  ;;  %v489_v44 = vld [vmem:[%s2546_s2 + $0x98] sm:$0xff]  ;;  %v2043_v45 = vpack.c.bf16 %v471_v41, %v470_v40  ;;  %v472_v47 = vld [vmem:[%s2546_s2 + $0x10] sm:$0xff]  ;;  %v490_v49 = vld [vmem:[%s2546_s2 + $0xa0] sm:$0xff] }
   0xc   :  { %1450 = vmatmul.mubr.msk.f32.vlgmr.msra.gmra.mrb[2].mxu0 %vm40_vm0, %v1963_v12  ;;  %1685 = vmatprep.subr.bf16.mxu1 %v1684_v31  ;;  %v2046_v46 = vpack.c.bf16 %v489_v44, %v488_v43  ;;  %v473_v48 = vld [vmem:[%s2546_s2 + $0x18] sm:$0xff]  ;;  %v491_v50 = vld [vmem:[%s2546_s2 + $0xa8] sm:$0xff] }
   0xd   :  { %1451 = vmatmul.mubr.msk.f32.vlgmr.msra.gmra.mrb[2].mxu1 %vm40_vm0, %v1963_v12  ;;  %1683 = vmatpush1.bf16.msra.mxu0 %v1682_v35 }
   0xe   :  { %1687 = vmatpush1.bf16.msra.mxu1 %v1686_v39  ;;  %392 = vmatprep.mubr.f32.mxu0 %v1909_v7 }
   0xf   :  { %463 = vmatprep.mubr.f32.mxu1 %v1909_v7  ;;  %1689 = vmatprep.subr.bf16.mxu0 %v2031_v42 }
  0x10   :  { %1452 = vmatmul.mubr.msk.f32.vlgmr.msra.gmra.mrb[4].mxu0 %vm40_vm0, %v1963_v12  ;;  %1721 = vmatprep.subr.bf16.mxu1 %v2031_v42 }
  0x11   :  { %8 = vsyncpa [#allocation3], 0  ;;  %1453 = vmatmul.mubr.msk.f32.vlgmr.msra.gmra.mrb[4].mxu1 %vm40_vm0, %v1963_v12  ;;  %1691 = vmatpush3.bf16.msra.mxu0 %v2043_v45  ;;  %v2068_v51 = vpack.c.bf16 %v473_v48, %v472_v47  ;;  %v2072_v52 = vpack.c.bf16 %v491_v50, %v490_v49  ;;  %v474_v53 = vld [vmem:[%s2546_s2 + $0x20] sm:$0xff]  ;;  %v475_v54 = vld [vmem:[%s2546_s2 + $0x28] sm:$0xff]  ;;  %vm515_vm1 = vcmask 1041409   ;;  %vm518_vm2 = vcmask 1042434  }
  0x12   :  { %1723 = vmatpush3.bf16.msra.mxu1 %v2043_v45  ;;  %1693 = vmatprep.subr.bf16.mxu0 %v2046_v46  ;;  %v492_v55 = vld [vmem:[%s2546_s2 + $0xb0] sm:$0xff]  ;;  %v493_v56 = vld [vmem:[%s2546_s2 + $0xb8] sm:$0xff]  ;;  %v2088_v57 = vpack.c.bf16 %v475_v54, %v474_v53  ;;  %v494_v61 = vld [vmem:[%s2546_s2 + $0xc0] sm:$0xff]  ;;  %vm521_vm3 = vcmask 1043459   ;;  %vm524_vm4 = vcmask 1044484   ;;  %vm527_vm5 = vcmask 1045509  }
  0x13   :  { %1725 = vmatprep.subr.bf16.mxu1 %v2046_v46  ;;  %v2092_v58 = vpack.c.bf16 %v493_v56, %v492_v55  ;;  %v476_v59 = vld [vmem:[%s2546_s2 + $0x30] sm:$0xff]  ;;  %v477_v60 = vld [vmem:[%s2546_s2 + $0x38] sm:$0xff]  ;;  %v495_v62 = vld [vmem:[%s2546_s2 + $0xc8] sm:$0xff]  ;;  %vm665_vm6 = vcmask 286720  }
  0x14   :  { %v2108_v63 = vpack.c.bf16 %v477_v60, %v476_v59  ;;  %v2112_v0 = vpack.c.bf16 %v495_v62, %v494_v61  ;;  %v478_v1 = vld [vmem:[%s2546_s2 + $0x40] sm:$0xff]  ;;  %v479_v2 = vld [vmem:[%s2546_s2 + $0x48] sm:$0xff]  ;;  %v496_v4 = vld [vmem:[%s2546_s2 + $0xd0] sm:$0xff] }
  0x15   :  { %1695 = vmatpush3.bf16.msra.mxu0 %v2068_v51  ;;  %v2122_v3 = vpack.c.bf16 %v479_v2, %v478_v1  ;;  %v497_v5 = vld [vmem:[%s2546_s2 + $0xd8] sm:$0xff]  ;;  %v480_v7 = vld [vmem:[%s2546_s2 + $0x50] sm:$0xff]  ;;  %v498_v10 = vld [vmem:[%s2546_s2 + $0xe0] sm:$0xff] }
  0x16   :  { %1727 = vmatpush3.bf16.msra.mxu1 %v2068_v51  ;;  %1697 = vmatprep.subr.bf16.mxu0 %v2072_v52  ;;  %v2135_v6 = vpack.c.bf16 %v497_v5, %v496_v4  ;;  %v481_v8 = vld [vmem:[%s2546_s2 + $0x58] sm:$0xff]  ;;  %v499_v11 = vld [vmem:[%s2546_s2 + $0xe8] sm:$0xff]  ;;  %v482_v13 = vld [vmem:[%s2546_s2 + $0x60] sm:$0xff] }
  0x17   :  { %1729 = vmatprep.subr.bf16.mxu1 %v2072_v52  ;;  %v2143_v9 = vpack.c.bf16 %v481_v8, %v480_v7  ;;  %v2155_v12 = vpack.c.bf16 %v499_v11, %v498_v10  ;;  %v483_v14 = vld [vmem:[%s2546_s2 + $0x68] sm:$0xff]  ;;  %v500_v16 = vld [vmem:[%s2546_s2 + $0xf0] sm:$0xff]  ;;  %v501_v17 = vld [vmem:[%s2546_s2 + $0xf8] sm:$0xff] }
  0x18   :  { %v2163_v15 = vpack.c.bf16 %v483_v14, %v482_v13  ;;  %v484_v18 = vld [vmem:[%s2546_s2 + $0x70] sm:$0xff]  ;;  %v2178_v19 = vpack.c.bf16 %v501_v17, %v500_v16  ;;  %v485_v20 = vld [vmem:[%s2546_s2 + $0x78] sm:$0xff]  ;;  %s1911_s2 = smov [#allocation2]  }
  0x19   :  { %1699 = vmatpush3.bf16.msra.mxu0 %v2088_v57  ;;  %v2183_v21 = vpack.c.bf16 %v485_v20, %v484_v18  ;;  %s1437_s12 = sshll.u32 %s1911_s2, 4  ;;  %s1438_s12 = int_to_ptr.vmem [resolvable:$true] %s1437_s12 }
  0x1a   :  { %1731 = vmatpush3.bf16.msra.mxu1 %v2088_v57  ;;  %1701 = vmatprep.subr.bf16.mxu0 %v2092_v58  ;;  %s1885_s13 = scalar_lea.vmem %s1438_s12, 768  ;;  %p1890_p1 = scmp.lt.s32.totalorder %s1438_s12, %s1438_s12 }
  0x1b   :  { %1733 = vmatprep.subr.bf16.mxu1 %v2092_v58  ;;  %p1886_p0 = scmp.ne.s32.totalorder %s1438_s12, %s1885_s13  ;;  %p1891_p2 = scmp.lt.s32.totalorder %s1885_s13, %s1885_s13 }
  0x1d   :  { %1703 = vmatpush3.bf16.msra.mxu0 %v2108_v63  ;;  %p1892_p3 = por %p1891_p2, %p1890_p1 }
  0x1e   :  { %1735 = vmatpush3.bf16.msra.mxu1 %v2108_v63  ;;  %1705 = vmatprep.subr.bf16.mxu0 %v2112_v0 }
  0x1f   :  { %1737 = vmatprep.subr.bf16.mxu1 %v2112_v0  ;;  %p1893_p4 = pnand %p1892_p3, %p1886_p0 }
  0x21   :  { %1707 = vmatpush3.bf16.msra.mxu0 %v2122_v3 }
  0x22   :  { %1739 = vmatpush3.bf16.msra.mxu1 %v2122_v3  ;;  %1709 = vmatprep.subr.bf16.mxu0 %v2135_v6 }
  0x23   :  { %1741 = vmatprep.subr.bf16.mxu1 %v2135_v6 }
  0x25   :  { %1711 = vmatpush3.bf16.msra.mxu0 %v2143_v9 }
  0x26   :  { %1743 = vmatpush3.bf16.msra.mxu1 %v2143_v9  ;;  %1713 = vmatprep.subr.bf16.mxu0 %v2155_v12 }
  0x27   :  { %1745 = vmatprep.subr.bf16.mxu1 %v2155_v12 }
  0x29   :  { %1715 = vmatpush3.bf16.msra.mxu0 %v2163_v15 }
  0x2a   :  { %1747 = vmatpush3.bf16.msra.mxu1 %v2163_v15  ;;  %1717 = vmatprep.subr.bf16.mxu0 %v2178_v19 }
  0x2b   :  { %1749 = vmatprep.subr.bf16.mxu1 %v2178_v19 }
  0x2d   :  { %1719 = vmatpush3.bf16.msra.mxu0 %v2183_v21 }
  0x2e   :  { %1751 = vmatpush3.bf16.msra.mxu1 %v2183_v21  ;;  %1753 = vmatprep.subr.bf16.mxu0 %v2031_v42 }
  0x2f   :  { %1785 = vmatprep.subr.bf16.mxu1 %v2031_v42 }
  0xdb   :  { %v2191_v22 = vpop.f32.mrb[0].mxu0 }
  0xdc   :  { %v672_v23 = vrot.slane %v2191_v22, 1  ;;  %v824_v24 = vrot.slane %v2191_v22, 2  ;;  %v976_v25 = vrot.slane %v2191_v22, 3  ;;  %v2197_v27 = vpop.f32.mrb[0].mxu1  ;;  %v2199_v28 = vpop.f32.mrb[1].mxu0 }
  0xdd   :  { %v514_v30 = vrot.slane %v2197_v27, 7  ;;  %v825_v31 = vrot.slane %v2197_v27, 1  ;;  %v977_v32 = vrot.slane %v2197_v27, 2  ;;  %v2205_v33 = vpop.f32.mrb[1].mxu1  ;;  %v682_v37 = vrot.slane %v2199_v28, 1 }
  0xde   :  { %v2209_v34 = vsel %vm515_vm1, %v2197_v27, %v672_v23  ;;  %v834_v38 = vrot.slane %v2199_v28, 2  ;;  %v986_v39 = vrot.slane %v2199_v28, 3  ;;  %v1138_v40 = vrot.slane %v2199_v28, 4 }
  0xdf   :  { %v2218_v43 = vpop.f32.mrb[2].mxu0  ;;  %v529_v44 = vrot.slane %v2205_v33, 7  ;;  %v835_v47 = vrot.slane %v2205_v33, 1  ;;  %v987_v48 = vrot.slane %v2205_v33, 2  ;;  %v1139_v49 = vrot.slane %v2205_v33, 3 }
  0xe0   :  { %v2224_v50 = vpop.f32.mrb[2].mxu1  ;;  %v2226_v53 = vpop.f32.mrb[3].mxu0  ;;  %v517_v55 = vrot.slane %v2218_v43, 6  ;;  %v674_v56 = vrot.slane %v2218_v43, 7  ;;  %v979_v59 = vrot.slane %v2218_v43, 1  ;;  %v683_v36 = vsel %vm515_vm1, %v2205_v33, %v682_v37 }
  0xe1   :  { %v2232_v60 = vpop.f32.mrb[3].mxu1  ;;  %v520_v1 = vrot.slane %v2224_v50, 5  ;;  %v676_v2 = vrot.slane %v2224_v50, 6  ;;  %v828_v4 = vrot.slane %v2224_v50, 7  ;;  %v531_v8 = vrot.slane %v2226_v53, 6 }
  0xe2   :  { %v684_v11 = vrot.slane %v2226_v53, 7  ;;  %v989_v13 = vrot.slane %v2226_v53, 1  ;;  %v530_v23 = vsel %vm515_vm1, %v529_v44, %v2199_v28  ;;  %v533_v7 = vrot.slane %v2232_v60, 5 }
  0xe3   :  { %v2242_v10 = vpop.f32.mrb[4].mxu0  ;;  %v532_v29 = vsel %vm518_vm2, %v531_v8, %v530_v23  ;;  %v686_v35 = vrot.slane %v2232_v60, 6  ;;  %v516_v54 = vsel %vm515_vm1, %v514_v30, %v2191_v22 }
  0xe4   :  { %v2248_v17 = vpop.f32.mrb[4].mxu1  ;;  %v2250_v18 = vpop.f32.mrb[5].mxu0  ;;  %v685_v61 = vsel %vm518_vm2, %v684_v11, %v683_v36  ;;  %v534_v26 = vsel %vm521_vm3, %v533_v7, %v532_v29  ;;  %v519_v8 = vsel %vm518_vm2, %v517_v55, %v516_v54  ;;  %v523_v23 = vrot.slane %v2242_v10, 4 }
  0xe5   :  { %v2252_v20 = vpop.f32.mrb[5].mxu1  ;;  %v535_v62 = vrot.slane %v2250_v18, 4  ;;  %v688_v16 = vrot.slane %v2250_v18, 5  ;;  %v687_v37 = vsel %vm521_vm3, %v686_v35, %v685_v61  ;;  %v522_v29 = vsel %vm521_vm3, %v520_v1, %v519_v8 }
  0xe6   :  { %v537_v5 = vrot.slane %v2252_v20, 3  ;;  %v690_v44 = vrot.slane %v2252_v20, 4  ;;  %v526_v7 = vrot.slane %v2248_v17, 3  ;;  %v525_v30 = vsel %vm524_vm4, %v523_v23, %v522_v29 }
  0xe7   :  { %v536_v41 = vsel %vm524_vm4, %v535_v62, %v534_v26  ;;  %v689_v11 = vsel %vm524_vm4, %v688_v16, %v687_v37  ;;  %v675_v26 = vsel %vm518_vm2, %v674_v56, %v2209_v34  ;;  %v678_v35 = vrot.slane %v2242_v10, 5 }
  0xe8   :  { %v538_v36 = vsel %vm527_vm5, %v537_v5, %v536_v41  ;;  %v691_v14 = vsel %vm527_vm5, %v690_v44, %v689_v11  ;;  %v528_v54 = vsel %vm527_vm5, %v526_v7, %v525_v30  ;;  %v677_v41 = vsel %vm521_vm3, %v676_v2, %v675_v26 }
  0xe9   :  { %605 = vmatprep.mubr.f32.mxu0 %v538_v36  ;;  %758 = vmatprep.mubr.f32.mxu1 %v691_v14  ;;  %v680_v55 = vrot.slane %v2248_v17, 4  ;;  %v836_v61 = vsel %vm515_vm1, %v835_v47, %v834_v38  ;;  %v679_v62 = vsel %vm524_vm4, %v678_v35, %v677_v41  ;;  %v838_v34 = vrot.slane %v2232_v60, 7 }
  0xea   :  { %606 = vmatmul.mubr.f32.vlgmr.msra.gmra.mrb[6].mxu0 %v528_v54  ;;  %v837_v1 = vsel %vm518_vm2, %v2226_v53, %v836_v61  ;;  %v840_v56 = vrot.slane %v2250_v18, 6  ;;  %v842_v2 = vrot.slane %v2252_v20, 5  ;;  %v988_v38 = vsel %vm515_vm1, %v987_v48, %v986_v39 }
  0xeb   :  { %v681_v5 = vsel %vm527_vm5, %v680_v55, %v679_v62  ;;  %1755 = vmatpush3.bf16.msra.mxu0 %v2043_v45  ;;  %v992_v47 = vrot.slane %v2250_v18, 7  ;;  %v839_v14 = vsel %vm521_vm3, %v838_v34, %v837_v1  ;;  %v990_v16 = vsel %vm518_vm2, %v989_v13, %v988_v38 }
  0xec   :  { %759 = vmatmul.mubr.f32.vlgmr.msra.gmra.mrb[6].mxu1 %v681_v5  ;;  %v994_v44 = vrot.slane %v2252_v20, 6  ;;  %1757 = vmatprep.subr.bf16.mxu0 %v2046_v46  ;;  %v826_v37 = vsel %vm515_vm1, %v825_v31, %v824_v24  ;;  %v841_v39 = vsel %vm524_vm4, %v840_v56, %v839_v14  ;;  %v991_v48 = vsel %vm521_vm3, %v2232_v60, %v990_v16 }
  0xed   :  { %1787 = vmatpush3.bf16.msra.mxu1 %v2043_v45  ;;  %v827_v13 = vsel %vm518_vm2, %v2218_v43, %v826_v37  ;;  %v830_v8 = vrot.slane %v2242_v10, 6  ;;  %v843_v23 = vsel %vm527_vm5, %v842_v2, %v841_v39  ;;  %v993_v36 = vsel %vm524_vm4, %v992_v47, %v991_v48 }
  0xee   :  { %1789 = vmatprep.subr.bf16.mxu1 %v2046_v46  ;;  %v829_v24 = vsel %vm521_vm3, %v828_v4, %v827_v13  ;;  %v832_v31 = vrot.slane %v2248_v17, 5  ;;  %910 = vmatprep.mubr.f32.mxu0 %v843_v23  ;;  %v995_v11 = vsel %vm527_vm5, %v994_v44, %v993_v36  ;;  %v978_v7 = vsel %vm515_vm1, %v977_v32, %v976_v25 }
  0xef   :  { %1759 = vmatpush3.bf16.msra.mxu0 %v2068_v51  ;;  %v831_v29 = vsel %vm524_vm4, %v830_v8, %v829_v24  ;;  %v982_v30 = vrot.slane %v2242_v10, 7  ;;  %1062 = vmatprep.mubr.f32.mxu1 %v995_v11  ;;  %v980_v26 = vsel %vm518_vm2, %v979_v59, %v978_v7  ;;  %v984_v35 = vrot.slane %v2248_v17, 6 }
  0xf0   :  { %1761 = vmatprep.subr.bf16.mxu0 %v2072_v52  ;;  %v833_v4 = vsel %vm527_vm5, %v832_v31, %v831_v29  ;;  %v1140_v54 = vsel %vm515_vm1, %v1139_v49, %v1138_v40  ;;  %v981_v25 = vsel %vm521_vm3, %v2224_v50, %v980_v26  ;;  %v2548_v32 = vrot.slane %v2226_v53, 2 }
  0xf1   :  { %1791 = vmatpush3.bf16.msra.mxu1 %v2068_v51  ;;  %v1143_v55 = vrot.slane %v2232_v60, 1  ;;  %v1146_v59 = vrot.slane %v2252_v20, 7  ;;  %v983_v61 = vsel %vm524_vm4, %v982_v30, %v981_v25  ;;  %v2549_v62 = vrot.slane %v2199_v28, 5 }
  0xf2   :  { %v1142_v41 = vsel %vm518_vm2, %v2548_v32, %v1140_v54  ;;  %1793 = vmatprep.subr.bf16.mxu1 %v2072_v52  ;;  %v2550_v40 = vrot.slane %v2205_v33, 4  ;;  %v1295_v1 = vrot.slane %v2232_v60, 2  ;;  %v1297_v34 = vrot.slane %v2250_v18, 1 }
  0xf3   :  { %1763 = vmatpush3.bf16.msra.mxu0 %v2088_v57  ;;  %v985_v56 = vsel %vm527_vm5, %v984_v35, %v983_v61  ;;  %v1144_v5 = vsel %vm521_vm3, %v1143_v55, %v1142_v41  ;;  %v2551_v2 = vrot.slane %v2226_v53, 3  ;;  %v2552_v28 = vrot.slane %v2191_v22, 4 }
  0xf4   :  { %v1292_v49 = vsel %vm515_vm1, %v2550_v40, %v2549_v62  ;;  %v2553_v33 = vrot.slane %v2197_v27, 3  ;;  %1765 = vmatprep.subr.bf16.mxu0 %v2092_v58  ;;  %v1145_v60 = vsel %vm524_vm4, %v2250_v18, %v1144_v5  ;;  %v2554_v16 = vrot.slane %v2218_v43, 2 }
  0xf5   :  { %v1294_v38 = vsel %vm518_vm2, %v2551_v2, %v1292_v49  ;;  %v1136_v53 = vrot.slane %v2248_v17, 7  ;;  %1795 = vmatpush3.bf16.msra.mxu1 %v2088_v57  ;;  %v1147_v37 = vsel %vm527_vm5, %v1146_v59, %v1145_v60  ;;  %v2555_v48 = vrot.slane %v2224_v50, 1 }
  0xf6   :  { %v1130_v47 = vsel %vm515_vm1, %v2553_v33, %v2552_v28  ;;  %v1296_v14 = vsel %vm521_vm3, %v1295_v1, %v1294_v38  ;;  %v2556_v18 = vrot.slane %v2191_v22, 5  ;;  %v2557_v8 = vrot.slane %v2197_v27, 4  ;;  %1797 = vmatprep.subr.bf16.mxu1 %v2092_v58 }
  0xf7   :  { %v1132_v44 = vsel %vm518_vm2, %v2554_v16, %v1130_v47  ;;  %v1298_v39 = vsel %vm524_vm4, %v1297_v34, %v1296_v14  ;;  %v2558_v31 = vrot.slane %v2218_v43, 3  ;;  %v1287_v29 = vrot.slane %v2242_v10, 1  ;;  %1767 = vmatpush3.bf16.msra.mxu0 %v2108_v63 }
  0xf8   :  { %v1134_v13 = vsel %vm521_vm3, %v2555_v48, %v1132_v44  ;;  %v1282_v23 = vsel %vm515_vm1, %v2557_v8, %v2556_v18  ;;  %v1299_v36 = vsel %vm527_vm5, %v2252_v20, %v1298_v39  ;;  %v2559_v27 = vrot.slane %v2224_v50, 2  ;;  %1769 = vmatprep.subr.bf16.mxu0 %v2112_v0 }
  0xf9   :  { %v1135_v24 = vsel %vm524_vm4, %v2242_v10, %v1134_v13  ;;  %v1284_v11 = vsel %vm518_vm2, %v2558_v31, %v1282_v23  ;;  %1799 = vmatpush3.bf16.msra.mxu1 %v2108_v63 }
  0xfa   :  { %v1137_v22 = vsel %vm527_vm5, %v1136_v53, %v1135_v24  ;;  %v1286_v7 = vsel %vm521_vm3, %v2559_v27, %v1284_v11  ;;  %1801 = vmatprep.subr.bf16.mxu1 %v2112_v0 }
  0xfb   :  { %v1288_v20 = vsel %vm524_vm4, %v1287_v29, %v1286_v7  ;;  %1771 = vmatpush3.bf16.msra.mxu0 %v2122_v3 }
  0xfc   :  { %v1289_v43 = vsel %vm527_vm5, %v2248_v17, %v1288_v20  ;;  %1773 = vmatprep.subr.bf16.mxu0 %v2135_v6 }
  0xfd   :  { %1803 = vmatpush3.bf16.msra.mxu1 %v2122_v3 }
  0xfe   :  { %1805 = vmatprep.subr.bf16.mxu1 %v2135_v6 }
  0xff   :  { %1775 = vmatpush3.bf16.msra.mxu0 %v2143_v9 }
 0x100   :  { %1777 = vmatprep.subr.bf16.mxu0 %v2155_v12 }
 0x101   :  { %1807 = vmatpush3.bf16.msra.mxu1 %v2143_v9 }
 0x102   :  { %1809 = vmatprep.subr.bf16.mxu1 %v2155_v12 }
 0x103   :  { %1779 = vmatpush3.bf16.msra.mxu0 %v2163_v15 }
 0x104   :  { %1781 = vmatprep.subr.bf16.mxu0 %v2178_v19 }
 0x105   :  { %1811 = vmatpush3.bf16.msra.mxu1 %v2163_v15 }
 0x106   :  { %1813 = vmatprep.subr.bf16.mxu1 %v2178_v19 }
 0x107   :  { %1783 = vmatpush3.bf16.msra.mxu0 %v2183_v21 }
 0x108   :  { %1817 = vmatprep.subr.bf16.mxu0 %v2031_v42 }
 0x109   :  { %1815 = vmatpush3.bf16.msra.mxu1 %v2183_v21 }
 0x10a   :  { %911 = vmatmul.mubr.f32.vlgmr.msra.gmra.mrb[8].mxu0 %v833_v4  ;;  %1849 = vmatprep.subr.bf16.mxu1 %v2031_v42  ;;  %v1910_v42 = vmov 1966171168  }
 0x10b   :  { %1819 = vmatpush3.bf16.msra.mxu0 %v2043_v45  ;;  %1214 = vmatprep.mubr.f32.mxu0 %v1147_v37 }
 0x10c   :  { %1063 = vmatmul.mubr.f32.vlgmr.msra.gmra.mrb[8].mxu1 %v985_v56  ;;  %1821 = vmatprep.subr.bf16.mxu0 %v2046_v46 }
 0x10d   :  { %1851 = vmatpush3.bf16.msra.mxu1 %v2043_v45  ;;  %1366 = vmatprep.mubr.f32.mxu1 %v1299_v36  ;;  %v614_v45 = vunpack.c.l.s4 %v1910_v42 }
 0x10e   :  { %1853 = vmatprep.subr.bf16.mxu1 %v2046_v46  ;;  %v616_v46 = vlaneseq }
 0x10f   :  { %1823 = vmatpush3.bf16.msra.mxu0 %v2068_v51 }
 0x110   :  { %1825 = vmatprep.subr.bf16.mxu0 %v2072_v52 }
 0x111   :  { %1855 = vmatpush3.bf16.msra.mxu1 %v2068_v51  ;;  %v615_v51 = vunpack.c.0.s8 %v614_v45 }
 0x112   :  { %1857 = vmatprep.subr.bf16.mxu1 %v2072_v52  ;;  %v617_v52 = vshrl.u32 %v616_v46, 7 }
 0x113   :  { %1827 = vmatpush3.bf16.msra.mxu0 %v2088_v57 }
 0x114   :  { %1829 = vmatprep.subr.bf16.mxu0 %v2092_v58 }
 0x115   :  { %1859 = vmatpush3.bf16.msra.mxu1 %v2088_v57 }
 0x116   :  { %1861 = vmatprep.subr.bf16.mxu1 %v2092_v58  ;;  %v2458_v58 = vsub.s32 %v615_v51, %v617_v52 }
 0x117   :  { %1831 = vmatpush3.bf16.msra.mxu0 %v2108_v63 }
 0x118   :  { %1833 = vmatprep.subr.bf16.mxu0 %v2112_v0 }
 0x119   :  { %1863 = vmatpush3.bf16.msra.mxu1 %v2108_v63 }
 0x11a   :  { %1865 = vmatprep.subr.bf16.mxu1 %v2112_v0 }
 0x11b   :  { %1835 = vmatpush3.bf16.msra.mxu0 %v2122_v3 }
 0x11c   :  { %1837 = vmatprep.subr.bf16.mxu0 %v2135_v6 }
 0x11d   :  { %1867 = vmatpush3.bf16.msra.mxu1 %v2122_v3 }
 0x11e   :  { %1869 = vmatprep.subr.bf16.mxu1 %v2135_v6 }
 0x11f   :  { %1839 = vmatpush3.bf16.msra.mxu0 %v2143_v9 }
 0x120   :  { %1841 = vmatprep.subr.bf16.mxu0 %v2155_v12 }
 0x121   :  { %1871 = vmatpush3.bf16.msra.mxu1 %v2143_v9 }
 0x122   :  { %1873 = vmatprep.subr.bf16.mxu1 %v2155_v12 }
 0x123   :  { %1843 = vmatpush3.bf16.msra.mxu0 %v2163_v15 }
 0x124   :  { %1845 = vmatprep.subr.bf16.mxu0 %v2178_v19 }
 0x125   :  { %1875 = vmatpush3.bf16.msra.mxu1 %v2163_v15 }
 0x126   :  { %1877 = vmatprep.subr.bf16.mxu1 %v2178_v19 }
 0x127   :  { %1847 = vmatpush3.bf16.msra.mxu0 %v2183_v21 }
 0x129   :  { %1879 = vmatpush3.bf16.msra.mxu1 %v2183_v21 }
 0x12a   :  { %1215 = vmatmul.mubr.f32.vlgmr.msra.gmra.mrb[10].mxu0 %v1137_v22 }
 0x12c   :  { %1367 = vmatmul.mubr.f32.vlgmr.msra.gmra.mrb[10].mxu1 %v1289_v43 }
 0x1bd   :  { %v1486_v57 = vpop.f32.mrb[6].mxu0 }
 0x1be   :  { %v1487_v63 = vpop.f32.mrb[7].mxu0 }
 0x1bf   :  { %v1521_v0 = vpop.f32.mrb[6].mxu1  ;;  %v1488_v3 = vadd.f32 %v1487_v63, %v1486_v57 }
 0x1c0   :  { %v1522_v6 = vpop.f32.mrb[7].mxu1 }
 0x1c1   :  { %v612_v9 = vcombine.high %v1488_v3, %v1488_v3  ;;  %v619_v12 = vrot.slane %v1488_v3, %v2458_v58  ;;  %v1523_v15 = vadd.f32 %v1522_v6, %v1521_v0 }
 0x1c3   :  { %v626_v19 = vrot.slane %v612_v9, %v2458_v58  ;;  %v627_v21 = vcombine.high %v619_v12, %v619_v12  ;;  %v635_v50 = vrot.slane %v619_v12, %v2458_v58  ;;  %v765_v10 = vcombine.high %v1523_v15, %v1523_v15 }
 0x1c4   :  { %v772_v17 = vrot.slane %v1523_v15, %v2458_v58 }
 0x1c5   :  { %v628_v30 = vcombine.high %v626_v19, %v626_v19  ;;  %v642_v4 = vrot.slane %v626_v19, %v2458_v58  ;;  %v649_v26 = vrot.slane %v627_v21, %v2458_v58  ;;  %v657_v35 = vcombine.high %v635_v50, %v635_v50  ;;  %666 = vst.msk [vmem:[#allocation2] sm:$0x1] %vm665_vm6, %v635_v50 }
 0x1c6   :  { %v779_v54 = vrot.slane %v765_v10, %v2458_v58  ;;  %v780_v25 = vcombine.high %v772_v17, %v772_v17  ;;  %v788_v32 = vrot.slane %v772_v17, %v2458_v58 }
 0x1c7   :  { %v656_v41 = vrot.slane %v628_v30, %v2458_v58  ;;  %v658_v55 = vcombine.high %v649_v26, %v649_v26  ;;  %667 = vst.msk [vmem:[#allocation2 + $0x8] sm:$0x1] %vm665_vm6, %v649_v26  ;;  %668 = vst.msk [vmem:[#allocation2 + $0x10] sm:$0x1] %vm665_vm6, %v657_v35 }
 0x1c8   :  { %670 = vst.msk [vmem:[#allocation2 + $0x20] sm:$0x1] %vm665_vm6, %v642_v4  ;;  %v781_v59 = vcombine.high %v779_v54, %v779_v54  ;;  %v795_v61 = vrot.slane %v779_v54, %v2458_v58  ;;  %v802_v62 = vrot.slane %v780_v25, %v2458_v58  ;;  %v810_v40 = vcombine.high %v788_v32, %v788_v32 }
 0x1c9   :  { %818 = vst.msk [vmem:[#allocation2 + $0x1] sm:$0x1] %vm665_vm6, %v788_v32  ;;  %669 = vst.msk [vmem:[#allocation2 + $0x18] sm:$0x1] %vm665_vm6, %v658_v55 }
 0x1ca   :  { %671 = vst.msk [vmem:[#allocation2 + $0x28] sm:$0x1] %vm665_vm6, %v656_v41  ;;  %v809_v49 = vrot.slane %v781_v59, %v2458_v58  ;;  %v811_v1 = vcombine.high %v802_v62, %v802_v62  ;;  %819 = vst.msk [vmem:[#allocation2 + $0x9] sm:$0x1] %vm665_vm6, %v802_v62 }
 0x1cb   :  { %820 = vst.msk [vmem:[#allocation2 + $0x11] sm:$0x1] %vm665_vm6, %v810_v40  ;;  %822 = vst.msk [vmem:[#allocation2 + $0x21] sm:$0x1] %vm665_vm6, %v795_v61 }
 0x1cc   :  { %821 = vst.msk [vmem:[#allocation2 + $0x19] sm:$0x1] %vm665_vm6, %v811_v1  ;;  %823 = vst.msk [vmem:[#allocation2 + $0x29] sm:$0x1] %vm665_vm6, %v809_v49 }
 0x1dd   :  { %v1556_v34 = vpop.f32.mrb[8].mxu0 }
 0x1de   :  { %v1557_v56 = vpop.f32.mrb[9].mxu0 }
 0x1df   :  { %v1591_v5 = vpop.f32.mrb[8].mxu1  ;;  %v1558_v2 = vadd.f32 %v1557_v56, %v1556_v34 }
 0x1e0   :  { %v1592_v38 = vpop.f32.mrb[9].mxu1 }
 0x1e1   :  { %v917_v28 = vcombine.high %v1558_v2, %v1558_v2  ;;  %v924_v33 = vrot.slane %v1558_v2, %v2458_v58  ;;  %v1593_v47 = vadd.f32 %v1592_v38, %v1591_v5 }
 0x1e3   :  { %v931_v60 = vrot.slane %v917_v28, %v2458_v58  ;;  %v932_v14 = vcombine.high %v924_v33, %v924_v33  ;;  %v940_v16 = vrot.slane %v924_v33, %v2458_v58  ;;  %v1069_v44 = vcombine.high %v1593_v47, %v1593_v47 }
 0x1e4   :  { %v1076_v53 = vrot.slane %v1593_v47, %v2458_v58 }
 0x1e5   :  { %v933_v37 = vcombine.high %v931_v60, %v931_v60  ;;  %v947_v39 = vrot.slane %v931_v60, %v2458_v58  ;;  %v954_v48 = vrot.slane %v932_v14, %v2458_v58  ;;  %v962_v13 = vcombine.high %v940_v16, %v940_v16  ;;  %970 = vst.msk [vmem:[#allocation2 + $0x2] sm:$0x1] %vm665_vm6, %v940_v16 }
 0x1e6   :  { %v1083_v18 = vrot.slane %v1069_v44, %v2458_v58  ;;  %v1084_v8 = vcombine.high %v1076_v53, %v1076_v53  ;;  %v1092_v23 = vrot.slane %v1076_v53, %v2458_v58 }
 0x1e7   :  { %v961_v36 = vrot.slane %v933_v37, %v2458_v58  ;;  %v963_v24 = vcombine.high %v954_v48, %v954_v48  ;;  %971 = vst.msk [vmem:[#allocation2 + $0xa] sm:$0x1] %vm665_vm6, %v954_v48  ;;  %972 = vst.msk [vmem:[#allocation2 + $0x12] sm:$0x1] %vm665_vm6, %v962_v13 }
 0x1e8   :  { %974 = vst.msk [vmem:[#allocation2 + $0x22] sm:$0x1] %vm665_vm6, %v947_v39  ;;  %v1085_v31 = vcombine.high %v1083_v18, %v1083_v18  ;;  %v1099_v11 = vrot.slane %v1083_v18, %v2458_v58  ;;  %v1106_v29 = vrot.slane %v1084_v8, %v2458_v58  ;;  %v1114_v22 = vcombine.high %v1092_v23, %v1092_v23 }
 0x1e9   :  { %1122 = vst.msk [vmem:[#allocation2 + $0x3] sm:$0x1] %vm665_vm6, %v1092_v23  ;;  %973 = vst.msk [vmem:[#allocation2 + $0x1a] sm:$0x1] %vm665_vm6, %v963_v24 }
 0x1ea   :  { %975 = vst.msk [vmem:[#allocation2 + $0x2a] sm:$0x1] %vm665_vm6, %v961_v36  ;;  %v1113_v27 = vrot.slane %v1085_v31, %v2458_v58  ;;  %v1115_v7 = vcombine.high %v1106_v29, %v1106_v29  ;;  %1123 = vst.msk [vmem:[#allocation2 + $0xb] sm:$0x1] %vm665_vm6, %v1106_v29 }
 0x1eb   :  { %1124 = vst.msk [vmem:[#allocation2 + $0x13] sm:$0x1] %vm665_vm6, %v1114_v22  ;;  %1126 = vst.msk [vmem:[#allocation2 + $0x23] sm:$0x1] %vm665_vm6, %v1099_v11 }
 0x1ec   :  { %1125 = vst.msk [vmem:[#allocation2 + $0x1b] sm:$0x1] %vm665_vm6, %v1115_v7  ;;  %1127 = vst.msk [vmem:[#allocation2 + $0x2b] sm:$0x1] %vm665_vm6, %v1113_v27 }
 0x1fd   :  { %v1626_v20 = vpop.f32.mrb[10].mxu0 }
 0x1fe   :  { %v1627_v43 = vpop.f32.mrb[11].mxu0 }
 0x1ff   :  { %v1661_v42 = vpop.f32.mrb[10].mxu1  ;;  %v1628_v45 = vadd.f32 %v1627_v43, %v1626_v20 }
 0x200   :  { %v1662_v46 = vpop.f32.mrb[11].mxu1 }
 0x201   :  { %v1221_v51 = vcombine.high %v1628_v45, %v1628_v45  ;;  %v1228_v52 = vrot.slane %v1628_v45, %v2458_v58  ;;  %v1663_v57 = vadd.f32 %v1662_v46, %v1661_v42 }
 0x203   :  { %v1235_v63 = vrot.slane %v1221_v51, %v2458_v58  ;;  %v1236_v0 = vcombine.high %v1228_v52, %v1228_v52  ;;  %v1244_v3 = vrot.slane %v1228_v52, %v2458_v58  ;;  %v1373_v6 = vcombine.high %v1663_v57, %v1663_v57 }
 0x204   :  { %v1380_v9 = vrot.slane %v1663_v57, %v2458_v58 }
 0x205   :  { %v1237_v12 = vcombine.high %v1235_v63, %v1235_v63  ;;  %v1251_v15 = vrot.slane %v1235_v63, %v2458_v58  ;;  %v1258_v19 = vrot.slane %v1236_v0, %v2458_v58  ;;  %v1266_v21 = vcombine.high %v1244_v3, %v1244_v3  ;;  %1274 = vst.msk [vmem:[#allocation2 + $0x4] sm:$0x1] %vm665_vm6, %v1244_v3 }
 0x206   :  { %v1387_v50 = vrot.slane %v1373_v6, %v2458_v58  ;;  %v1388_v10 = vcombine.high %v1380_v9, %v1380_v9  ;;  %v1396_v17 = vrot.slane %v1380_v9, %v2458_v58 }
 0x207   :  { %v1265_v30 = vrot.slane %v1237_v12, %v2458_v58  ;;  %v1267_v4 = vcombine.high %v1258_v19, %v1258_v19  ;;  %1275 = vst.msk [vmem:[#allocation2 + $0xc] sm:$0x1] %vm665_vm6, %v1258_v19  ;;  %1276 = vst.msk [vmem:[#allocation2 + $0x14] sm:$0x1] %vm665_vm6, %v1266_v21 }
 0x208   :  { %1278 = vst.msk [vmem:[#allocation2 + $0x24] sm:$0x1] %vm665_vm6, %v1251_v15  ;;  %v1389_v26 = vcombine.high %v1387_v50, %v1387_v50  ;;  %v1403_v35 = vrot.slane %v1387_v50, %v2458_v58  ;;  %v1410_v54 = vrot.slane %v1388_v10, %v2458_v58  ;;  %v1418_v25 = vcombine.high %v1396_v17, %v1396_v17 }
 0x209   :  { %1426 = vst.msk [vmem:[#allocation2 + $0x5] sm:$0x1] %vm665_vm6, %v1396_v17  ;;  %1277 = vst.msk [vmem:[#allocation2 + $0x1c] sm:$0x1] %vm665_vm6, %v1267_v4 }
 0x20a   :  { %1279 = vst.msk [vmem:[#allocation2 + $0x2c] sm:$0x1] %vm665_vm6, %v1265_v30  ;;  %v1417_v32 = vrot.slane %v1389_v26, %v2458_v58  ;;  %v1419_v41 = vcombine.high %v1410_v54, %v1410_v54  ;;  %1427 = vst.msk [vmem:[#allocation2 + $0xd] sm:$0x1] %vm665_vm6, %v1410_v54 }
 0x20b   :  { %1428 = vst.msk [vmem:[#allocation2 + $0x15] sm:$0x1] %vm665_vm6, %v1418_v25  ;;  %1430 = vst.msk [vmem:[#allocation2 + $0x25] sm:$0x1] %vm665_vm6, %v1403_v35 }
 0x20c   :  { %1429 = vst.msk [vmem:[#allocation2 + $0x1d] sm:$0x1] %vm665_vm6, %v1419_v41  ;;  %1431 = vst.msk [vmem:[#allocation2 + $0x2d] sm:$0x1] %vm665_vm6, %v1417_v32 }
 0x20d   :  { %1896 = shalt.err (!%p1893_p4)
}
 0x20e   :  { %s1897_s15 = scalar_lea.hbm %s2547_s3, 768 }
 0x20f   :  { %p1898_p5 = scmp.ne.s32.totalorder %s2547_s3, %s1897_s15  ;;  %p1901_p6 = scmp.lt.u32.totalorder %s1897_s15, %s2547_s3 }
 0x211   :  { %p1903_p7 = pnand %p1901_p6, %p1898_p5 }
 0x213   :  { %1906 = shalt.err (!%p1903_p7)
}
 0x214   :  { %s1912_s20 = smov 128   ;;  %s1913_s21 = smov 8  }
 0x215   :  { %1443 = dma.vmem_to_hbm [thread:$0]  %s1438_s12, 768, %s2547_s3, [#allocation3], %s1912_s20, %s1912_s20, %s1913_s21  }
 0x216   :  { %1907 = dma.done.wait [#allocation3], 768  }
 0x217   :  { %1908 = vsyncadd [#allocation3], 4294966528 }
 0x218   :  { %1447 = vsyncpa [#allocation3], 1 }

</bundles_post_ra>
